<compile_context>
chip_gen: v7x
topology: tpu7x:2x2x1
jax: 0.10.0
libtpu: 0.0.40
codegen_flags: <defaults>
</compile_context>

<pallas_src>
import math
import functools

import jax
import jax.numpy as jnp
from jax.experimental import pallas as pl
from jax.experimental.pallas import tpu as pltpu


VMEM_LIMIT_BYTES = 48 * 1024 * 1024  # fits v7x (64 MiB phys), bumps v5e's 16 MiB default


# ----------------------------------------------------------------------------
# Deterministic parameter construction: gaussian orthogonal random matrix
# (same recipe as the PyTorch module's __init__, scaling=0).
# ----------------------------------------------------------------------------
def gaussian_orthogonal_random_matrix(key, nb_rows, nb_columns, scaling=0):
    nb_full_blocks = nb_rows // nb_columns
    keys = jax.random.split(key, nb_full_blocks + 2)
    blocks = []
    for i in range(nb_full_blocks):
        unstructured = jax.random.normal(keys[i], (nb_columns, nb_columns), dtype=jnp.float32)
        qm, _ = jnp.linalg.qr(unstructured)
        blocks.append(qm.T)
    remaining = nb_rows - nb_full_blocks * nb_columns
    if remaining > 0:
        unstructured = jax.random.normal(keys[nb_full_blocks], (nb_columns, nb_columns),
                                         dtype=jnp.float32)
        qm, _ = jnp.linalg.qr(unstructured)
        blocks.append(qm.T[:remaining])
    final_matrix = jnp.concatenate(blocks, axis=0)
    if scaling == 0:
        multiplier = jnp.linalg.norm(
            jax.random.normal(keys[-1], (nb_rows, nb_columns), dtype=jnp.float32), axis=1)
    elif scaling == 1:
        multiplier = math.sqrt(float(nb_columns)) * jnp.ones((nb_rows,), dtype=jnp.float32)
    else:
        raise ValueError(f"Invalid scaling {scaling}")
    return jnp.diag(multiplier) @ final_matrix


def _pick_tile(total, max_tile):
    """Largest tile <= max_tile that divides `total` and is sublane-aligned."""
    if total <= max_tile:
        return total
    for t in range(max_tile, 7, -1):
        if total % t == 0 and t % 8 == 0:
            return t
    return total  # fall back: a single full block (correctness over perf)


# ----------------------------------------------------------------------------
# Pallas kernels
# ----------------------------------------------------------------------------
def _kmax_kernel(k_ref, projt_ref, max_ref, *, mm_dtype):
    # k_ref: (R_TILE, D) f32, projt_ref: (D, M) mm_dtype (normalizer folded in)
    # max_ref: (1, 1, M) f32 — per-tile column maxes of k_dash (tiny output;
    # avoids writing / re-reading the full (B,H,N,M) k_dash through HBM).
    kd = jnp.dot(k_ref[...].astype(mm_dtype), projt_ref[...],
                 preferred_element_type=jnp.float32)                    # (R_TILE, M)
    max_ref[...] = jnp.max(kd, axis=0, keepdims=True).reshape(max_ref.shape)


def _context_kernel(k_ref, vaug_ref, projt_ref, kmax_ref, ctx_ref, *,
                    half_norm_sq, ratio, eps, mm_dtype):
    # Reduction over kv chunks (last grid axis, 'arbitrary'); the output block
    # (ctx_aug per (b,h)) is resident across it and used as the accumulator.
    c = pl.program_id(1)

    @pl.when(c == 0)
    def _():
        ctx_ref[...] = jnp.zeros_like(ctx_ref)

    k = k_ref[0]                                                        # (KV_TILE, D) f32
    kd = jnp.dot(k.astype(mm_dtype), projt_ref[...],
                 preferred_element_type=jnp.float32)                    # (KV_TILE, M)
    k_diag = jnp.sum(k * k, axis=-1, keepdims=True) * half_norm_sq      # (KV_TILE, 1)
    k_prime = ratio * (jnp.exp(kd - k_diag - kmax_ref[0, 0]) + eps)     # (KV_TILE, M)

    # ctx_aug += k_prime^T @ [v | 1]   -> (M, E+1): columns 0..E-1 are the
    # context, column E is k_cumsum (denominator) — one MXU matmul for both.
    ctx_ref[0] += jax.lax.dot_general(
        k_prime.astype(mm_dtype), vaug_ref[0],
        (((0,), (0,)), ((), ())), preferred_element_type=jnp.float32)


def _output_kernel(q_ref, ctx_ref, projt_ref, out_ref, *,
                   half_norm_sq, ratio, eps, e_dim, mm_dtype):
    q = q_ref[0]                                                        # (Q_TILE, D) f32
    qd = jnp.dot(q.astype(mm_dtype), projt_ref[...],
                 preferred_element_type=jnp.float32)                    # (Q_TILE, M)
    q_diag = jnp.sum(q * q, axis=-1, keepdims=True) * half_norm_sq      # (Q_TILE, 1)
    q_prime = ratio * (jnp.exp(qd - q_diag
                               - jnp.max(qd, axis=-1, keepdims=True)) + eps)

    out_aug = jnp.dot(q_prime.astype(mm_dtype), ctx_ref[0].astype(mm_dtype),
                      preferred_element_type=jnp.float32)               # (Q_TILE, E+1)
    num = out_aug[:, :e_dim]
    denom = out_aug[:, e_dim:e_dim + 1]
    d_inv = pl.reciprocal(denom, approx=True)                           # EUP slot
    out_ref[0] = (num * d_inv).astype(out_ref.dtype)


# ----------------------------------------------------------------------------
# Wrapper
# ----------------------------------------------------------------------------
def fast_attention(q, k, v, projection_matrix, eps=1e-4, mm_dtype=jnp.bfloat16):
    B, H, N, D = q.shape
    E = v.shape[-1]
    M = projection_matrix.shape[0]
    BH = B * H
    normalizer = float(D) ** (-0.25)
    ratio = float(M) ** (-0.5)
    half_norm_sq = 0.5 * normalizer * normalizer

    # Fold the data normalizer into the (pre-transposed) projection once and
    # keep the matmul operand in bf16 (MXU accumulates in f32).
    projt = (projection_matrix.T.astype(jnp.float32) * normalizer).astype(mm_dtype)  # (D, M)

    q3 = q.reshape(BH, N, D)
    k3 = k.reshape(BH, N, D)
    # Augment v with a ones column so numerator and denominator come from one matmul.
    v_aug = jnp.concatenate(
        [v.reshape(BH, N, E).astype(jnp.float32), jnp.ones((BH, N, 1), jnp.float32)],
        axis=-1).astype(mm_dtype)                                                     # (BH, N, E+1)

    # ---- pass 1: global max of k_dash WITHOUT materializing it in HBM ----
    k2 = k3.reshape(BH * N, D)      # heads folded -> big MXU row dimension
    R_TILE = _pick_tile(BH * N, 1024)
    n_r = (BH * N) // R_TILE
    tile_maxes = pl.pallas_call(
        functools.partial(_kmax_kernel, mm_dtype=mm_dtype),
        out_shape=jax.ShapeDtypeStruct((n_r, 1, M), jnp.float32),
        grid=(n_r,),
        in_specs=[
            pl.BlockSpec((R_TILE, D), lambda i: (i, 0)),
            pl.BlockSpec((D, M), lambda i: (0, 0)),
        ],
        out_specs=pl.BlockSpec((1, 1, M), lambda i: (i, 0, 0)),
        compiler_params=pltpu.CompilerParams(
            dimension_semantics=("parallel",),
            vmem_limit_bytes=VMEM_LIMIT_BYTES),
    )(k2, projt)
    # Tiny reduction in plain JAX (n_r x M elements).
    k_max = jnp.max(tile_maxes).reshape(1, 1).astype(jnp.float32)

    # ---- pass 2a: ctx_aug[bh] = sum_n k'[n]^T [v|1][n]  (N-tiled reduction) ----
    KV_TILE = _pick_tile(N, 512)
    n_kv = N // KV_TILE
    ctx_aug = pl.pallas_call(
        functools.partial(_context_kernel, half_norm_sq=half_norm_sq,
                          ratio=ratio, eps=eps, mm_dtype=mm_dtype),
        out_shape=jax.ShapeDtypeStruct((BH, M, E + 1), jnp.float32),
        grid=(BH, n_kv),
        in_specs=[
            pl.BlockSpec((1, KV_TILE, D), lambda b, c: (b, c, 0)),       # k
            pl.BlockSpec((1, KV_TILE, E + 1), lambda b, c: (b, c, 0)),   # [v | 1]
            pl.BlockSpec((D, M), lambda b, c: (0, 0)),                   # proj^T (scaled)
            pl.BlockSpec(memory_space=pltpu.MemorySpace.SMEM),           # global k max
        ],
        out_specs=pl.BlockSpec((1, M, E + 1), lambda b, c: (b, 0, 0)),
        compiler_params=pltpu.CompilerParams(
            dimension_semantics=("parallel", "arbitrary"),
            vmem_limit_bytes=VMEM_LIMIT_BYTES),
    )(k3, v_aug, projt, k_max)

    # ---- pass 2b: out = (q' @ ctx_aug)[:, :E] / (q' @ ctx_aug)[:, E] ----
    Q_TILE = _pick_tile(N, 512)
    n_q = N // Q_TILE
    out = pl.pallas_call(
        functools.partial(_output_kernel, half_norm_sq=half_norm_sq,
                          ratio=ratio, eps=eps, e_dim=E, mm_dtype=mm_dtype),
        out_shape=jax.ShapeDtypeStruct((BH, N, E), q.dtype),
        grid=(BH, n_q),
        in_specs=[
            pl.BlockSpec((1, Q_TILE, D), lambda b, i: (b, i, 0)),        # q
            pl.BlockSpec((1, M, E + 1), lambda b, i: (b, 0, 0)),         # ctx_aug
            pl.BlockSpec((D, M), lambda b, i: (0, 0)),                   # proj^T (scaled)
        ],
        out_specs=pl.BlockSpec((1, Q_TILE, E), lambda b, i: (b, i, 0)),
        compiler_params=pltpu.CompilerParams(
            dimension_semantics=("parallel", "parallel"),
            vmem_limit_bytes=VMEM_LIMIT_BYTES),
    )(q3, ctx_aug, projt)

    return out.reshape(B, H, N, E)


# ----------------------------------------------------------------------------
# Pure-JAX reference (mirrors the PyTorch forward exactly) for validation.
# ----------------------------------------------------------------------------
def fast_attention_ref(q, k, v, proj, eps=1e-4):
    d = q.shape[-1]
    m = proj.shape[0]
    norm = float(d) ** (-0.25)
    ratio = float(m) ** (-0.5)
    qd = jnp.einsum('bhnd,md->bhnm', q * norm, proj)
    kd = jnp.einsum('bhnd,md->bhnm', k * norm, proj)
    q_diag = jnp.sum(q ** 2, -1, keepdims=True) / 2.0 * norm ** 2
    k_diag = jnp.sum(k ** 2, -1, keepdims=True) / 2.0 * norm ** 2
    qp = ratio * (jnp.exp(qd - q_diag - jnp.max(qd, -1, keepdims=True)) + eps)
    kp = ratio * (jnp.exp(kd - k_diag - jnp.max(kd)) + eps)
    k_cumsum = kp.sum(-2)
    d_inv = 1.0 / jnp.einsum('bhnm,bhm->bhn', qp, k_cumsum)
    context = jnp.einsum('bhnm,bhne->bhme', kp, v)
    return jnp.einsum('bhme,bhnm,bhn->bhne', context, qp, d_inv)


if __name__ == "__main__":
    # Small shapes consistent with the module: dim_heads=32, nb_features=64.
    B, H, N, D, M = 2, 2, 8, 32, 64

    key = jax.random.PRNGKey(0)
    k_proj, k_q, k_k, k_v = jax.random.split(key, 4)

    projection_matrix = gaussian_orthogonal_random_matrix(k_proj, M, D, scaling=0)
    q = jax.random.normal(k_q, (B, H, N, D), dtype=jnp.float32)
    k = jax.random.normal(k_k, (B, H, N, D), dtype=jnp.float32)
    v = jax.random.normal(k_v, (B, H, N, D), dtype=jnp.float32)

    out = jax.block_until_ready(fast_attention(q, k, v, projection_matrix))

    ref = fast_attention_ref(q, k, v, projection_matrix)
    # bf16 matmuls + approx reciprocal -> loosened tolerance vs the f32 reference.
    if not jnp.allclose(out, ref, rtol=5e-2, atol=5e-2):
        raise AssertionError("Pallas FastAttention output mismatch vs reference")

    print("KERNEL_OK")
</pallas_src>

<mosaic_0001>
module attributes {stable_mosaic.version = 11 : i64} {
  func.func @_kmax_kernel(%arg0: i32, %arg1: memref<32x32xf32, #tpu.memory_space<vmem>>, %arg2: memref<32x64xbf16, #tpu.memory_space<vmem>>, %arg3: memref<1x1x64xf32, #tpu.memory_space<vmem>>) attributes {dimension_semantics = [#tpu.dimension_semantics<parallel>], iteration_bounds = array<i64: 1>, scalar_prefetch = 0 : i64, scratch_operands = 0 : i64, tpu.core_type = #tpu.core_type<tc>, window_params = [{transform_indices = @transform_0, window_bounds = array<i64: 32, 32>}, {pipeline_mode = #tpu.pipeline_mode<synchronous>, transform_indices = @transform_1, window_bounds = array<i64: 32, 64>}, {transform_indices = @transform_2, window_bounds = array<i64: 1, 1, 64>}]} {
    %c0 = arith.constant 0 : index
    %c0_0 = arith.constant 0 : index
    %0 = vector.load %arg1[%c0, %c0_0] : memref<32x32xf32, #tpu.memory_space<vmem>>, vector<32x32xf32>
    %1 = arith.truncf %0 : vector<32x32xf32> to vector<32x32xbf16>
    %c0_1 = arith.constant 0 : index
    %c0_2 = arith.constant 0 : index
    %2 = vector.load %arg2[%c0_1, %c0_2] : memref<32x64xbf16, #tpu.memory_space<vmem>>, vector<32x64xbf16>
    %cst = arith.constant dense<0.000000e+00> : vector<32x64xf32>
    %3 = tpu.matmul %1, %2, %cst {dimension_numbers = #tpu.dot_dimension_numbers<[1], [0], [0], [1], [0, 0, 1, 1], [], []>} : vector<32x32xbf16>, vector<32x64xbf16>, vector<32x64xf32> -> vector<32x64xf32>
    %cst_3 = arith.constant dense<0xFF800000> : vector<64xf32>
    %4 = vector.multi_reduction <maximumf>, %3, %cst_3 [0] : vector<32x64xf32> to vector<64xf32>
    %5 = vector.shape_cast %4 : vector<64xf32> to vector<1x64xf32>
    %6 = vector.shape_cast %5 : vector<1x64xf32> to vector<1x1x64xf32>
    %c0_4 = arith.constant 0 : index
    %c0_5 = arith.constant 0 : index
    %c0_6 = arith.constant 0 : index
    %7 = vector.load %arg3[%c0_4, %c0_5, %c0_6] : memref<1x1x64xf32, #tpu.memory_space<vmem>>, vector<1x1x64xf32>
    tpu.vector_store %arg3[%c0_4, %c0_5, %c0_6], %6 {strides = array<i32>} : memref<1x1x64xf32, #tpu.memory_space<vmem>>, vector<1x1x64xf32>,
    return
  }
  func.func @transform_0(%arg0: i32) -> (i32, i32) {
    %c0_i32 = arith.constant 0 : i32
    %c0_i32_0 = arith.constant 0 : i32
    return %arg0, %c0_i32 : i32, i32
  }
  func.func @transform_1(%arg0: i32) -> (i32, i32) {
    %c0_i32 = arith.constant 0 : i32
    %c0_i32_0 = arith.constant 0 : i32
    %c0_i32_1 = arith.constant 0 : i32
    return %c0_i32, %c0_i32_0 : i32, i32
  }
  func.func @transform_2(%arg0: i32) -> (i32, i32, i32) {
    %c0_i32 = arith.constant 0 : i32
    %c0_i32_0 = arith.constant 0 : i32
    %c0_i32_1 = arith.constant 0 : i32
    return %arg0, %c0_i32, %c0_i32_0 : i32, i32, i32
  }
}

</mosaic_0001>

<bundles_post_ra>
// kernel: tpu_custom_call.1
= control target key start
LH: loop header
LB: loop body
LE: loop exit
PB: predicated region body
PF: predicated region fallthrough
CT: control target
= control target key end

     0   :  { %7 = vsyncpa [#allocation3], 0  ;;  %s306_s0 = inlined_call_operand.hbm [shape: f32[32,32], index: 0, kind: input, shape index: {}]   ;;  %s307_s1 = inlined_call_operand.hbm [shape: bf16[32,64], index: 1, kind: input, shape index: {}]   ;;  %s308_s2 = inlined_call_operand.hbm [shape: f32[1,1,64], index: 2, kind: output, shape index: {}]  }
   0x1   :  { %8 = vsyncpa [#allocation6], 0 }
   0x2   :  { %9 = vsyncpa [#allocation4], 0  ;;  %s248_s9 = smov [#allocation2]   ;;  %s176_s13 = scalar_lea.hbm %s306_s0, 512 }
   0x3   :  { %s15_s10 = sshll.u32 %s248_s9, 4  ;;  %p177_p0 = scmp.ne.s32.totalorder %s306_s0, %s176_s13  ;;  %s16_s10 = int_to_ptr.vmem [resolvable:$true] %s15_s10 }
   0x4   :  { %p180_p1 = scmp.lt.u32.totalorder %s176_s13, %s306_s0 }
   0x6   :  { %p182_p2 = pnand %p180_p1, %p177_p0 }
   0x8   :  { %185 = shalt.err (!%p182_p2)
}
   0x9   :  { %s186_s18 = scalar_lea.vmem %s16_s10, 512  ;;  %p191_p4 = scmp.lt.s32.totalorder %s16_s10, %s16_s10 }
   0xa   :  { %p187_p3 = scmp.ne.s32.totalorder %s16_s10, %s186_s18  ;;  %p192_p5 = scmp.lt.s32.totalorder %s186_s18, %s186_s18 }
   0xc   :  { %p193_p6 = por %p192_p5, %p191_p4 }
   0xe   :  { %p194_p7 = pnand %p193_p6, %p187_p3 }
  0x10   :  { %197 = shalt.err (!%p194_p7)
}
  0x11   :  { %s249_s19 = smov 128   ;;  %s250_s20 = smov 8  }
  0x12   :  { %21 = dma.hbm_to_vmem [thread:$0]  %s306_s0, 512, %s16_s10, [#allocation3], %s249_s19, %s249_s19, %s250_s20  }
  0x13   :  { %s251_s23 = smov [#allocation5]   ;;  %s198_s27 = scalar_lea.hbm %s307_s1, 256 }
  0x14   :  { %s27_s24 = sshll.u32 %s251_s23, 4  ;;  %p199_p8 = scmp.ne.s32.totalorder %s307_s1, %s198_s27  ;;  %s28_s24 = int_to_ptr.vmem [resolvable:$true] %s27_s24 }
  0x15   :  { %p202_p9 = scmp.lt.u32.totalorder %s198_s27, %s307_s1 }
  0x17   :  { %p204_p10 = pnand %p202_p9, %p199_p8 }
  0x19   :  { %207 = shalt.err (!%p204_p10)
}
  0x1a   :  { %s208_s4 = scalar_lea.vmem %s28_s24, 256  ;;  %p213_p12 = scmp.lt.s32.totalorder %s28_s24, %s28_s24 }
  0x1b   :  { %p209_p11 = scmp.ne.s32.totalorder %s28_s24, %s208_s4  ;;  %p214_p13 = scmp.lt.s32.totalorder %s208_s4, %s208_s4 }
  0x1d   :  { %p215_p0 = por %p214_p13, %p213_p12 }
  0x1f   :  { %p216_p1 = pnand %p215_p0, %p209_p11 }
  0x21   :  { %219 = shalt.err (!%p216_p1)
}
  0x22   :  { %s252_s0 = smov 64   ;;  %s253_s5 = smov 4  }
  0x23   :  { %33 = dma.hbm_to_vmem [thread:$0]  %s307_s1, 256, %s28_s24, [#allocation6], %s252_s0, %s252_s0, %s253_s5  }
  0x24   :  { %242 = dma.done.wait [#allocation3], 512  }
  0x25   :  { %243 = vsyncadd [#allocation3], 4294966784 }
  0x26   :  { %244 = dma.done.wait [#allocation6], 256  }
  0x27   :  { %245 = vsyncadd [#allocation6], 4294967040  ;;  %v174_v0 = vld [vmem:[#allocation5] sm:$0xff]   ;;  %v175_v1 = vld [vmem:[#allocation5 + $0x8] sm:$0xff]   ;;  %vm63_vm0 = vcmask 261120   ;;  %vm119_vm1 = vcmask 523264  }
  0x28   :  { %159 = vmatprep.subr.bf16.mxu0 %v174_v0  ;;  %v41_v2 = vld [vmem:[#allocation2] sm:$0xff]  ;;  %v42_v3 = vld [vmem:[#allocation2 + $0x8] sm:$0xff]  ;;  %v43_v5 = vld [vmem:[#allocation2 + $0x10] sm:$0xff]  ;;  %s254_s1 = smov [#allocation7]   ;;  %vm133_vm2 = vcmask 516096  }
  0x29   :  { %160 = vmatpush3.bf16.msra.mxu0 %v174_v0  ;;  %v45_v4 = vpack.c.bf16 %v42_v3, %v41_v2  ;;  %v44_v6 = vld [vmem:[#allocation2 + $0x18] sm:$0xff]  ;;  %s141_s8 = sshll.u32 %s254_s1, 4  ;;  %s142_s8 = int_to_ptr.vmem [resolvable:$true] %s141_s8 }
  0x2a   :  { %161 = vmatprep.subr.bf16.mxu0 %v175_v1  ;;  %v46_v7 = vpack.c.bf16 %v44_v6, %v43_v5  ;;  %s220_s9 = scalar_lea.vmem %s142_s8, 16  ;;  %s224_s10 = scalar_lea.vmem %s142_s8, 32 }
  0x2b   :  { %163 = vmatprep.mubr.msk.bf16.mxu0 %vm63_vm0, %v45_v4  ;;  %p221_p2 = scmp.ne.s32.totalorder %s142_s8, %s220_s9  ;;  %p225_p3 = scmp.lt.s32.totalorder %s142_s8, %s142_s8 }
  0x2c   :  { %p226_p4 = scmp.lt.s32.totalorder %s224_s10, %s220_s9 }
  0x2d   :  { %162 = vmatpush3.bf16.msra.mxu0 %v175_v1 }
  0x2e   :  { %p227_p5 = por %p226_p4, %p225_p3 }
  0x30   :  { %164 = vmatmul.mubr.msk.bf16.vlgmr.msra.gmra.mrb[0].mxu0 %vm63_vm0, %v46_v7  ;;  %p228_p6 = pnand %p227_p5, %p221_p2 }
 0x103   :  { %v165_v8 = vpop.f32.mrb[0].mxu0 }
 0x104   :  { %v104_v9 = vpop.f32.mrb[1].mxu0  ;;  %v122_v11 = vsel %vm119_vm1, %v165_v8, -inf }
 0x105   :  { %v166_v10 = vpop.f32.mrb[2].mxu0  ;;  %v120_v14 = vsel %vm119_vm1, %v104_v9, -inf }
 0x106   :  { %v123_v12 = vsel %vm119_vm1, %v166_v10, -inf  ;;  %v107_v13 = vpop.f32.mrb[3].mxu0 }
 0x107   :  { %v125_v15 = vmax.f32 %v122_v11, %v123_v12  ;;  %v121_v16 = vsel %vm119_vm1, %v107_v13, -inf }
 0x108   :  { %v124_v17 = vmax.f32 %v120_v14, %v121_v16 }
 0x10a   :  { %v126_v18 = vmax.f32 %v124_v17, %v125_v15 }
 0x10c   :  { %v127_v19 = vrot.slane %v126_v18, 4 }
 0x10e   :  { %v128_v20 = vmax.f32 %v126_v18, %v127_v19 }
 0x110   :  { %v129_v21 = vrot.slane %v128_v20, 2 }
 0x112   :  { %v130_v22 = vmax.f32 %v128_v20, %v129_v21 }
 0x114   :  { %v131_v23 = vrot.slane %v130_v22, 1 }
 0x116   :  { %v132_v24 = vmax.f32 %v130_v22, %v131_v23 }
 0x118   :  { %134 = vst.msk [vmem:[#allocation7] sm:$0x1] %vm133_vm2, %v132_v24 }
 0x119   :  { %231 = shalt.err (!%p228_p6)
}
 0x11a   :  { %s232_s13 = scalar_lea.hbm %s308_s2, 16 }
 0x11b   :  { %p233_p7 = scmp.ne.s32.totalorder %s308_s2, %s232_s13  ;;  %p236_p8 = scmp.lt.u32.totalorder %s232_s13, %s308_s2 }
 0x11d   :  { %p238_p9 = pnand %p236_p8, %p233_p7 }
 0x11f   :  { %241 = shalt.err (!%p238_p9)
}
 0x120   :  { %144 = dma.vmem_to_hbm [thread:$0]  %s142_s8, 16, %s308_s2, [#allocation4]  }
 0x121   :  { %246 = dma.done.wait [#allocation4], 16  }
 0x122   :  { %247 = vsyncadd [#allocation4], 4294967280 }
 0x123   :  { %148 = vsyncpa [#allocation3], 1 }
 0x124   :  { %149 = vsyncpa [#allocation6], 1 }
 0x125   :  { %150 = vsyncpa [#allocation4], 1 }

</bundles_post_ra>
